<compile_context>
chip_gen: v5e
topology: v5e:2x2
jax: 0.10.0
libtpu: 0.0.40
codegen_flags: <defaults>
</compile_context>

<pallas_src>
import numpy as np
import jax
import jax.numpy as jnp
from jax.experimental import pallas as pl
from jax.experimental.pallas import tpu as pltpu


# ------------------------------------------------------------------ kernel ---
def _rope_kernel(pos_ref, invf_ref, x_ref, o_ref):
    # pos_ref  : (TS, 1)  float32  per-row sequence positions (offset / interpolated)
    # invf_ref : (1, D)   float32  inv-freqs, pair-repeated: [f0,f0,f1,f1,...]
    # x_ref    : (TS, HD)          TS rows of (head, head_dim)-flattened activations
    # o_ref    : (TS, HD)
    TS, HD = x_ref.shape
    D = invf_ref.shape[1]
    H = HD // D

    pos = pos_ref[...]                         # (TS, 1)
    invf = invf_ref[...]                       # (1, D)
    freqs = pos * invf                         # (TS, D)  per-head angles
    cos_d = jnp.cos(freqs)                     # EUP work per (row, D), not per head
    sin_d = jnp.sin(freqs)
    # Expand across heads with a cheap lane tile (lane index = h*D + j layout).
    cos = jnp.tile(cos_d, (1, H)) if H > 1 else cos_d   # (TS, HD)
    sin = jnp.tile(sin_d, (1, H)) if H > 1 else sin_d

    x = x_ref[...].astype(jnp.float32)         # (TS, HD)

    # rotate_half via XLU lane rotations + parity select (exact).
    # roll convention: roll(x, s)[i] == x[(i - s) % n]; shifts kept non-negative.
    x_next = pltpu.roll(x, HD - 1, axis=1)     # x_next[..., i] == x[..., (i+1) % HD]
    x_prev = pltpu.roll(x, 1, axis=1)          # x_prev[..., i] == x[..., (i-1) % HD]
    lane = jax.lax.broadcasted_iota(jnp.int32, (TS, HD), 1)
    is_even = (lane & 1) == 0
    # even lane 2i   -> -x[2i+1]   (wrap lane HD-1 is odd -> never selected here)
    # odd  lane 2i+1 ->  x[2i]     (wrap lane 0 is even  -> never selected here)
    x_rot = jnp.where(is_even, -x_next, x_prev)

    o_ref[...] = (x * cos + x_rot * sin).astype(o_ref.dtype)


# ----------------------------------------------------------------- helpers ---
def make_rotary_freqs(dim, theta=10000.0, theta_rescale_factor=1.0):
    """RotaryEmbedding.__init__ for freqs_for='lang' (deterministic, not learned)."""
    theta = theta * theta_rescale_factor ** (dim / (dim - 2))
    exponents = jnp.arange(0, dim, 2)[: dim // 2].astype(jnp.float32) / dim
    return 1.0 / (theta ** exponents)          # (dim // 2,)


def _choose_row_tile(rows, hd, itemsize, max_tile_bytes=4 * 1024 * 1024):
    """Pick a row tile TS and the (possibly padded) row count.

    Keeps one (TS, HD) slab under `max_tile_bytes` so double-buffered in+out
    tiles stay well inside VMEM on v5e/v6e/v7x, and respects the (8,128) tiling
    rule (TS multiple of 8 or the full row extent)."""
    cap = max(1, max_tile_bytes // max(1, hd * itemsize))
    if rows <= cap:
        return rows, rows                       # single full block (always legal)
    cap8 = max(8, cap - cap % 8)
    for cand in range(cap8, 7, -8):             # largest multiple-of-8 divisor
        if rows % cand == 0:
            return cand, rows
    padded = ((rows + cap8 - 1) // cap8) * cap8  # pad rows; pad rows are discarded
    return cap8, padded


# ----------------------------------------------------------------- wrapper ---
def rotate_queries_or_keys(x, inv_freq, offset=0, interpolate_factor=1.0,
                           max_tile_bytes=4 * 1024 * 1024):
    """Pallas equivalent of RotaryEmbedding.rotate_queries_or_keys (seq_dim=-3)."""
    B, S, H, D = x.shape
    assert D % 2 == 0
    assert 2 * inv_freq.shape[0] == D, "partial-dim rotation not supported"
    HD = H * D
    rows = B * S

    # get_seq_pos, replicated per batch row (row r -> seq position r % S).
    pos_seq = (jnp.arange(S, dtype=jnp.float32) + offset) / interpolate_factor
    pos_rows = jnp.tile(pos_seq, B).reshape(rows, 1)

    # inv_freq repeated within pairs ('n -> (n r)', r=2); head tiling done in-kernel.
    invf_rep = jnp.repeat(inv_freq.astype(jnp.float32), 2).reshape(1, D)

    x_rows = x.reshape(rows, HD)

    TS, padded_rows = _choose_row_tile(rows, HD, jnp.dtype(x.dtype).itemsize,
                                       max_tile_bytes=max_tile_bytes)
    if padded_rows != rows:
        x_rows = jnp.pad(x_rows, ((0, padded_rows - rows), (0, 0)))
        pos_rows = jnp.pad(pos_rows, ((0, padded_rows - rows), (0, 0)))

    grid = (padded_rows // TS,)

    out_rows = pl.pallas_call(
        _rope_kernel,
        out_shape=jax.ShapeDtypeStruct((padded_rows, HD), x.dtype),
        grid=grid,
        in_specs=[
            pl.BlockSpec((TS, 1), lambda r: (r, 0)),     # positions per row tile
            pl.BlockSpec((1, D), lambda r: (0, 0)),      # pair-repeated inv freqs
            pl.BlockSpec((TS, HD), lambda r: (r, 0)),    # activations
        ],
        out_specs=pl.BlockSpec((TS, HD), lambda r: (r, 0)),
        compiler_params=pltpu.CompilerParams(
            dimension_semantics=("parallel",),
            vmem_limit_bytes=32 * 1024 * 1024,
        ),
    )(pos_rows, invf_rep, x_rows)

    if padded_rows != rows:
        out_rows = out_rows[:rows]
    return out_rows.reshape(B, S, H, D)


# -------------------------------------------------------------- reference ---
def _rope_reference(x, inv_freq, offset=0, interpolate_factor=1.0):
    B, S, H, D = x.shape
    pos = (jnp.arange(S, dtype=jnp.float32) + offset) / interpolate_factor
    f = pos[:, None] * inv_freq[None, :]               # (S, D/2)
    f = jnp.repeat(f, 2, axis=-1)                      # (S, D), pair-interleaved
    cos = jnp.cos(f)[:, None, :]                       # broadcast over heads
    sin = jnp.sin(f)[:, None, :]
    x1 = x[..., 0::2]
    x2 = x[..., 1::2]
    x_rot = jnp.stack((-x2, x1), axis=-1).reshape(x.shape)
    return (x * cos + x_rot * sin).astype(x.dtype)


if __name__ == "__main__":
    key = jax.random.PRNGKey(0)

    # Main check: head_dim=32, 4 heads -> 128 lanes per token (lane-dense output).
    B, S, H, D = 2, 8, 4, 32
    x = jax.random.normal(key, (B, S, H, D), dtype=jnp.float32)
    inv_freq = make_rotary_freqs(D)   # deterministic "parameter" (learned_freq=False)

    out = rotate_queries_or_keys(x, inv_freq)
    out = jax.block_until_ready(out)
    ref = _rope_reference(x, inv_freq)
    np.testing.assert_allclose(np.asarray(out), np.asarray(ref), rtol=1e-5, atol=1e-5)

    # Secondary check: force the multi-step grid + row-padding path with a tiny
    # tile budget (rows=18 is not a multiple of 8 -> pad to 24, TS=8, grid=(3,)).
    B2, S2 = 2, 9
    x2 = jax.random.normal(jax.random.PRNGKey(1), (B2, S2, H, D), dtype=jnp.float32)
    out2 = rotate_queries_or_keys(x2, inv_freq, offset=3,
                                  max_tile_bytes=8 * H * D * 4)
    out2 = jax.block_until_ready(out2)
    ref2 = _rope_reference(x2, inv_freq, offset=3)
    np.testing.assert_allclose(np.asarray(out2), np.asarray(ref2), rtol=1e-5, atol=1e-5)

    print("KERNEL_OK")
</pallas_src>

<mosaic_0001>
module attributes {stable_mosaic.version = 11 : i64} {
  func.func @_rope_kernel(%arg0: i32, %arg1: memref<16x1xf32, #tpu.memory_space<vmem>>, %arg2: memref<1x32xf32, #tpu.memory_space<vmem>>, %arg3: memref<16x128xf32, #tpu.memory_space<vmem>>, %arg4: memref<16x128xf32, #tpu.memory_space<vmem>>) attributes {dimension_semantics = [#tpu.dimension_semantics<parallel>], iteration_bounds = array<i64: 1>, scalar_prefetch = 0 : i64, scratch_operands = 0 : i64, tpu.core_type = #tpu.core_type<tc>, window_params = [{transform_indices = @transform_0, window_bounds = array<i64: 16, 1>}, {pipeline_mode = #tpu.pipeline_mode<synchronous>, transform_indices = @transform_1, window_bounds = array<i64: 1, 32>}, {transform_indices = @transform_2, window_bounds = array<i64: 16, 128>}, {transform_indices = @transform_3, window_bounds = array<i64: 16, 128>}]} {
    %c0 = arith.constant 0 : index
    %c0_0 = arith.constant 0 : index
    %0 = vector.load %arg1[%c0, %c0_0] : memref<16x1xf32, #tpu.memory_space<vmem>>, vector<16x1xf32>
    %c0_1 = arith.constant 0 : index
    %c0_2 = arith.constant 0 : index
    %1 = vector.load %arg2[%c0_1, %c0_2] : memref<1x32xf32, #tpu.memory_space<vmem>>, vector<1x32xf32>
    %2 = vector.broadcast %0 : vector<16x1xf32> to vector<16x32xf32>
    %3 = vector.broadcast %1 : vector<1x32xf32> to vector<16x32xf32>
    %4 = arith.mulf %2, %3 : vector<16x32xf32>
    %5 = math.cos %4 : vector<16x32xf32>
    %6 = math.sin %4 : vector<16x32xf32>
    %7 = tpu.concatenate %5, %5, %5, %5 in 1 : vector<16x32xf32>, vector<16x32xf32>, vector<16x32xf32>, vector<16x32xf32> -> vector<16x128xf32>
    %8 = tpu.concatenate %6, %6, %6, %6 in 1 : vector<16x32xf32>, vector<16x32xf32>, vector<16x32xf32>, vector<16x32xf32> -> vector<16x128xf32>
    %c0_3 = arith.constant 0 : index
    %c0_4 = arith.constant 0 : index
    %9 = vector.load %arg3[%c0_3, %c0_4] : memref<16x128xf32, #tpu.memory_space<vmem>>, vector<16x128xf32>
    %c127_i32 = arith.constant 127 : i32
    %10 = tpu.dynamic_rotate %9 by %c127_i32 dim 1 : vector<16x128xf32>, i32 -> vector<16x128xf32>
    %c1_i32 = arith.constant 1 : i32
    %11 = tpu.dynamic_rotate %9 by %c1_i32 dim 1 : vector<16x128xf32>, i32 -> vector<16x128xf32>
    %12 = tpu.iota {dimensions = array<i32: 1>} : vector<16x128xi32>
    %c1_i32_5 = arith.constant 1 : i32
    %13 = vector.broadcast %c1_i32_5 : i32 to vector<16x128xi32>
    %14 = arith.andi %12, %13 : vector<16x128xi32>
    %c0_i32 = arith.constant 0 : i32
    %15 = vector.broadcast %c0_i32 : i32 to vector<16x128xi32>
    %16 = arith.cmpi eq, %14, %15 : vector<16x128xi32>
    %cst = arith.constant 0.000000e+00 : f32
    %17 = vector.broadcast %cst : f32 to vector<16x128xf32>
    %18 = arith.subf %17, %10 : vector<16x128xf32>
    %19 = arith.select %16, %18, %11 : vector<16x128xi1>, vector<16x128xf32>
    %20 = arith.mulf %9, %7 : vector<16x128xf32>
    %21 = arith.mulf %19, %8 : vector<16x128xf32>
    %22 = arith.addf %20, %21 : vector<16x128xf32>
    %c0_6 = arith.constant 0 : index
    %c0_7 = arith.constant 0 : index
    %23 = vector.load %arg4[%c0_6, %c0_7] : memref<16x128xf32, #tpu.memory_space<vmem>>, vector<16x128xf32>
    tpu.vector_store %arg4[%c0_6, %c0_7], %22 {strides = array<i32>} : memref<16x128xf32, #tpu.memory_space<vmem>>, vector<16x128xf32>,
    return
  }
  func.func @transform_0(%arg0: i32) -> (i32, i32) {
    %c0_i32 = arith.constant 0 : i32
    %c0_i32_0 = arith.constant 0 : i32
    return %arg0, %c0_i32 : i32, i32
  }
  func.func @transform_1(%arg0: i32) -> (i32, i32) {
    %c0_i32 = arith.constant 0 : i32
    %c0_i32_0 = arith.constant 0 : i32
    %c0_i32_1 = arith.constant 0 : i32
    return %c0_i32, %c0_i32_0 : i32, i32
  }
  func.func @transform_2(%arg0: i32) -> (i32, i32) {
    %c0_i32 = arith.constant 0 : i32
    %c0_i32_0 = arith.constant 0 : i32
    return %arg0, %c0_i32 : i32, i32
  }
  func.func @transform_3(%arg0: i32) -> (i32, i32) {
    %c0_i32 = arith.constant 0 : i32
    %c0_i32_0 = arith.constant 0 : i32
    return %arg0, %c0_i32 : i32, i32
  }
}

</mosaic_0001>

<bundles_post_ra>
// kernel: tpu_custom_call.1
= control target key start
LH: loop header
LB: loop body
LE: loop exit
PB: predicated region body
PF: predicated region fallthrough
CT: control target
= control target key end

     0   :  { %v805_v1 = vmov 0   ;;  %s1096_s0 = inlined_call_operand.vmem [shape: f32[16,1], index: 0, kind: input, shape index: {}]   ;;  %s1097_s1 = inlined_call_operand.vmem [shape: f32[1,32], index: 1, kind: input, shape index: {}]   ;;  %s1098_s2 = inlined_call_operand.vmem [shape: f32[16,128], index: 2, kind: input, shape index: {}]   ;;  %s1099_s3 = inlined_call_operand.hbm [shape: f32[16,128], index: 3, kind: output, shape index: {}]  }
   0x1   :  { %v15_v0 = vld [vmem:[%s1096_s0] sm:$0xff]  ;;  %777 = vset.pattern.permute.xlu0 %v805_v1 }
   0x2   :  { %20 = vperm.xlu0 %777, %v15_v0  }
   0x3   :  { %8 = vsyncpa [#allocation3], 0  ;;  %v16_v2 = vld [vmem:[%s1096_s0 + $0x8] sm:$0xff]  ;;  %v778_v3 = vld [vmem:[%s1097_s1] ss:$0 sm:$0xff]  ;;  %s812_s20 = smov 127  }
   0x4   :  { %v806_v22 = vmov 683565275   ;;  %v807_v24 = vmov 2475754826   ;;  %v808_v26 = vmov 2131351028  }
   0x5   :  { %v809_v30 = vmov 2102212464   ;;  %v872_v33 = vld [vmem:[%s1098_s2 + $0x8] sm:$0xff]  ;;  %v877_v34 = vld [vmem:[%s1098_s2] sm:$0xff]  ;;  %v810_v35 = vmov 920167782  }
   0x6   :  { %v811_v38 = vmov 1326507024   ;;  %710 = vrot.lane.b32.xlu1 %v872_v33, %s812_s20  ;;  %s813_s2 = smov 32   ;;  %s814_s21 = smov 64  }
   0x7   :  { %s815_s22 = smov 96   ;;  %s816_s23 = smov 1  }
   0x8   :  { %s817_s24 = smov [#allocation2]   ;;  %s738_s28 = sshll.u32 %s1099_s3, 4  ;;  %s739_s28 = int_to_ptr.hbm [resolvable:$true] %s738_s28 }
   0x9   :  { %s736_s25 = sshll.u32 %s817_s24, 4  ;;  %s818_s29 = smov 128   ;;  %s737_s25 = int_to_ptr.vmem [resolvable:$true] %s736_s25 }
   0xa   :  { %25 = vperm.xlu0 %777, %v16_v2   ;;  %s819_s30 = smov 8  }
  0x12   :  { %708 = vrot.lane.b32.xlu0 %v877_v34, %s812_s20 }
  0x74   :  { %v21_v4 = vpop.permute.xlu0 %20 }
  0x75   :  { %v850_v5 = vmul.f32 %v778_v3, %v21_v4 }
  0x77   :  { %v36_v6 = vand.u32 2139095040, %v850_v5  ;;  %v33_v8 = vand.u32 2147483647, %v850_v5 }
  0x79   :  { %v37_v7 = vshrl.u32 %v36_v6, 23  ;;  %v40_v13 = vand.u32 8388607, %v33_v8 }
  0x7b   :  { %v750_v9 = vadd.s32 4294967169, %v37_v7  ;;  %v41_v18 = vor.u32 8388608, %v40_v13 }
  0x7c   :  { %v26_v10 = vpop.permute.xlu0 %25 }
  0x7d   :  { %v43_v11 = vadd.s32 1, %v750_v9  ;;  %v854_v12 = vmul.f32 %v778_v3, %v26_v10  ;;  %v890_v48 = vshll.u32 %v41_v18, 8 }
  0x7f   :  { %vm44_vm0 = vcmp.gt.s32.totalorder %v43_v11, 0  ;;  %v190_v15 = vand.u32 2139095040, %v854_v12  ;;  %v187_v17 = vand.u32 2147483647, %v854_v12  ;;  %v902_v58 = vand.u32 65535, %v890_v48 }
  0x80   :  { %v45_v14 = vsel %vm44_vm0, %v43_v11, 0  ;;  %v83_v6 = vshrl.u32 %v890_v48, 16 }
  0x81   :  { %v47_v16 = vand.u32 31, %v45_v14  ;;  %v191_v20 = vshrl.u32 %v190_v15, 23  ;;  %v860_v21 = vshrl.u32 %v45_v14, 5  ;;  %v194_v40 = vand.u32 8388607, %v187_v17 }
  0x83   :  { %v48_v19 = vsub.s32 32, %v47_v16  ;;  %v50_v23 = vshll.u32 %v806_v22, %v47_v16  ;;  %v53_v25 = vshll.u32 %v807_v24, %v47_v16  ;;  %v56_v27 = vshll.u32 %v808_v26, %v47_v16 }
  0x84   :  { %v59_v32 = vshll.u32 %v809_v30, %v47_v16  ;;  %v62_v37 = vshll.u32 %v810_v35, %v47_v16  ;;  %v753_v44 = vadd.s32 4294967169, %v191_v20  ;;  %vm65_vm1 = vcmp.lt.s32.totalorder %v860_v21, 1 }
  0x85   :  { %v51_v28 = vshrl.u32 %v807_v24, %v48_v19  ;;  %v54_v29 = vshrl.u32 %v808_v26, %v48_v19  ;;  %v57_v31 = vshrl.u32 %v809_v30, %v48_v19  ;;  %v60_v36 = vshrl.u32 %v810_v35, %v48_v19 }
  0x86   :  { %v63_v39 = vshrl.u32 %v811_v38, %v48_v19  ;;  %vm67_vm2 = vcmp.lt.s32.totalorder %v860_v21, 3  ;;  %vm68_vm3 = vcmp.lt.s32.totalorder %v860_v21, 4  ;;  %v195_v51 = vor.u32 8388608, %v194_v40 }
  0x87   :  { %v52_v41 = vor.u32 %v51_v28, %v50_v23  ;;  %v55_v42 = vor.u32 %v54_v29, %v53_v25  ;;  %v58_v43 = vor.u32 %v57_v31, %v56_v27  ;;  %v61_v45 = vor.u32 %v60_v36, %v59_v32 }
  0x88   :  { %v64_v46 = vor.u32 %v63_v39, %v62_v37  ;;  %v197_v52 = vadd.s32 1, %v753_v44  ;;  %vm66_vm4 = vcmp.lt.s32.totalorder %v860_v21, 2  ;;  %v49_v61 = vshrl.u32 %v806_v22, %v48_v19 }
  0x89   :  { %v77_v47 = vsel %vm65_vm1, %v55_v42, %v58_v43  ;;  %v74_v49 = vsel %vm68_vm3, %v61_v45, 920167782  ;;  %v73_v53 = vsel %vm65_vm1, %v52_v41, %v55_v42  ;;  %v70_v57 = vsel %vm68_vm3, %v58_v43, 2102212464 }
  0x8a   :  { %v78_v50 = vsel %vm68_vm3, %v64_v46, 1326507024  ;;  %v75_v54 = vsel %vm67_vm2, %v58_v43, %v74_v49  ;;  %vm198_vm5 = vcmp.gt.s32.totalorder %v197_v52, 0  ;;  %v909_v0 = vshll.u32 %v195_v51, 8 }
  0x8b   :  { %v79_v55 = vsel %vm67_vm2, %v61_v45, %v78_v50  ;;  %v907_v62 = vsel %vm66_vm4, %v73_v53, %v75_v54  ;;  %v199_v63 = vsel %vm198_vm5, %v197_v52, 0  ;;  %v69_v3 = vsel %vm65_vm1, %v49_v61, %v52_v41 }
  0x8c   :  { %v80_v56 = vsel %vm66_vm4, %v77_v47, %v79_v55  ;;  %v71_v4 = vsel %vm67_vm2, %v55_v42, %v70_v57  ;;  %v106_v10 = vand.u32 65535, %v907_v62  ;;  %v201_v11 = vand.u32 31, %v199_v63 }
  0x8d   :  { %v84_v59 = vand.u32 65535, %v80_v56  ;;  %v85_v60 = vshrl.u32 %v80_v56, 16  ;;  %v107_v14 = vshrl.u32 %v907_v62, 16  ;;  %v926_v15 = vand.u32 65535, %v909_v0 }
  0x8e   :  { %v929_v16 = vshrl.u32 %v909_v0, 16  ;;  %v931_v19 = vshrl.u32 %v199_v63, 5  ;;  %v933_v20 = vsub.s32 32, %v201_v11  ;;  %v204_v27 = vshll.u32 %v806_v22, %v201_v11 }
  0x8f   :  { %v912_v2 = vmul.u32 %v85_v60, %v902_v58  ;;  %v86_v7 = vmul.u32 %v84_v59, %v902_v58  ;;  %v922_v13 = vmul.u32 %v84_v59, %v83_v6  ;;  %v89_v18 = vmul.u32 %v85_v60, %v83_v6 }
  0x90   :  { %v207_v28 = vshll.u32 %v807_v24, %v201_v11  ;;  %v205_v29 = vshrl.u32 %v807_v24, %v933_v20  ;;  %v208_v31 = vshrl.u32 %v808_v26, %v933_v20  ;;  %v210_v32 = vshll.u32 %v808_v26, %v201_v11 }
  0x91   :  { %v90_v9 = vshll.u32 %v912_v2, 16  ;;  %v213_v36 = vshll.u32 %v809_v30, %v201_v11  ;;  %v211_v37 = vshrl.u32 %v809_v30, %v933_v20  ;;  %v214_v39 = vshrl.u32 %v810_v35, %v933_v20 }
  0x92   :  { %v216_v40 = vshll.u32 %v810_v35, %v201_v11  ;;  %v217_v41 = vshrl.u32 %v811_v38, %v933_v20  ;;  %v92_v42 = vshll.u32 %v922_v13, 16  ;;  %v951_v43 = vor.u32 %v205_v29, %v204_v27 }
  0x93   :  { %vm94_vm6 = vc.u32 %v86_v7, %v90_v9  ;;  %v96_v25 = vadd.s32 %v90_v9, %v86_v7  ;;  %v953_v44 = vor.u32 %v208_v31, %v207_v28  ;;  %v955_v26 = vor.u32 %v211_v37, %v210_v32 }
  0x94   :  { %v95_v23 = vsel %vm94_vm6, 1, %v805_v1  ;;  %v215_v45 = vor.u32 %v214_v39, %v213_v36  ;;  %v218_v46 = vor.u32 %v217_v41, %v216_v40  ;;  %vm219_vm7 = vcmp.lt.s32.totalorder %v931_v19, 1 }
  0x95   :  { %v97_v24 = vadd.s32 %v95_v23, %v89_v18  ;;  %v109_v30 = vmul.u32 %v107_v14, %v902_v58  ;;  %vm222_vm8 = vcmp.lt.s32.totalorder %v931_v19, 4  ;;  %v227_v35 = vsel %vm219_vm7, %v951_v43, %v953_v44 }
  0x96   :  { %vm98_vm9 = vc.u32 %v96_v25, %v92_v42  ;;  %vm221_vm10 = vcmp.lt.s32.totalorder %v931_v19, 3  ;;  %v228_v38 = vsel %vm222_vm8, %v215_v45, 920167782  ;;  %v231_v47 = vsel %vm219_vm7, %v953_v44, %v955_v26 }
  0x97   :  { %v232_v49 = vsel %vm222_vm8, %v218_v46, 1326507024  ;;  %vm220_vm11 = vcmp.lt.s32.totalorder %v931_v19, 2  ;;  %v229_v50 = vsel %vm221_vm10, %v955_v26, %v228_v38  ;;  %v99_v52 = vsel %vm98_vm9, 1, %v805_v1 }
  0x98   :  { %v233_v51 = vsel %vm221_vm10, %v215_v45, %v232_v49  ;;  %v110_v53 = vmul.u32 %v106_v10, %v83_v6  ;;  %v230_v54 = vsel %vm220_vm11, %v227_v35, %v229_v50  ;;  %v101_v56 = vadd.s32 %v99_v52, %v97_v24 }
  0x99   :  { %v234_v55 = vsel %vm220_vm11, %v231_v47, %v233_v51  ;;  %v261_v60 = vshrl.u32 %v230_v54, 16  ;;  %v112_v61 = vshll.u32 %v109_v30, 16  ;;  %v986_v62 = vsel %vm66_vm4, %v69_v3, %v71_v4 }
  0x9a   :  { %v238_v57 = vand.u32 65535, %v234_v55  ;;  %v239_v59 = vshrl.u32 %v234_v55, 16  ;;  %v260_v63 = vand.u32 65535, %v230_v54  ;;  %v91_v7 = vshrl.u32 %v912_v2, 16 }
  0x9b   :  { %v108_v9 = vmul.u32 %v106_v10, %v902_v58  ;;  %v111_v11 = vmul.u32 %v107_v14, %v83_v6  ;;  %v263_v25 = vmul.u32 %v261_v60, %v926_v15  ;;  %v93_v27 = vshrl.u32 %v922_v13, 16 }
  0x9c   :  { %v241_v18 = vmul.u32 %v239_v59, %v926_v15  ;;  %v242_v23 = vmul.u32 %v238_v57, %v929_v16  ;;  %v102_v28 = vadd.s32 %v101_v56, %v91_v7  ;;  %v114_v29 = vshll.u32 %v110_v53, 16 }
  0x9d   :  { %v240_v21 = vmul.u32 %v238_v57, %v926_v15  ;;  %v243_v3 = vmul.u32 %v239_v59, %v929_v16  ;;  %vm116_vm12 = vc.u32 %v108_v9, %v112_v61  ;;  %v264_v58 = vmul.u32 %v260_v63, %v929_v16 }
  0x9e   :  { %v244_v4 = vshll.u32 %v241_v18, 16  ;;  %v246_v2 = vshll.u32 %v242_v23, 16  ;;  %v117_v6 = vsel %vm116_vm12, 1, %v805_v1  ;;  %v118_v10 = vadd.s32 %v112_v61, %v108_v9 }
  0x9f   :  { %v119_v31 = vadd.s32 %v117_v6, %v111_v11  ;;  %v266_v32 = vshll.u32 %v263_v25, 16  ;;  %v262_v36 = vmul.u32 %v260_v63, %v926_v15  ;;  %v113_v37 = vshrl.u32 %v109_v30, 16 }
  0xa0   :  { %vm248_vm13 = vc.u32 %v240_v21, %v244_v4  ;;  %v250_v14 = vadd.s32 %v244_v4, %v240_v21  ;;  %vm120_vm14 = vc.u32 %v118_v10, %v114_v29  ;;  %v265_v40 = vmul.u32 %v261_v60, %v929_v16 }
  0xa1   :  { %v249_v13 = vsel %vm248_vm13, 1, %v805_v1  ;;  %v121_v41 = vsel %vm120_vm14, 1, %v805_v1  ;;  %v103_v42 = vadd.s32 %v102_v28, %v93_v27  ;;  %v245_v45 = vshrl.u32 %v241_v18, 16 }
  0xa2   :  { %v251_v39 = vadd.s32 %v249_v13, %v243_v3  ;;  %vm252_vm15 = vc.u32 %v250_v14, %v246_v2  ;;  %v123_v24 = vadd.s32 %v121_v41, %v119_v31  ;;  %v268_v38 = vshll.u32 %v264_v58, 16 }
  0xa3   :  { %v253_v46 = vsel %vm252_vm15, 1, %v805_v1  ;;  %vm270_vm0 = vc.u32 %v262_v36, %v266_v32  ;;  %v272_v47 = vadd.s32 %v266_v32, %v262_v36  ;;  %v224_v15 = vsel %vm222_vm8, %v955_v26, 2102212464 }
  0xa4   :  { %v255_v35 = vadd.s32 %v253_v46, %v251_v39  ;;  %v115_v30 = vshrl.u32 %v110_v53, 16  ;;  %v124_v49 = vadd.s32 %v123_v24, %v113_v37  ;;  %v271_v16 = vsel %vm270_vm0, 1, %v805_v1 }
  0xa5   :  { %v122_v50 = vadd.s32 %v118_v10, %v114_v29  ;;  %v273_v52 = vadd.s32 %v271_v16, %v265_v40  ;;  %vm274_vm1 = vc.u32 %v272_v47, %v268_v38  ;;  %v203_v54 = vshrl.u32 %v806_v22, %v933_v20 }
  0xa6   :  { %v256_v51 = vadd.s32 %v255_v35, %v245_v45  ;;  %v125_v55 = vadd.s32 %v124_v49, %v115_v30  ;;  %v247_v56 = vshrl.u32 %v242_v23, 16  ;;  %v275_v57 = vsel %vm274_vm1, 1, %v805_v1 }
  0xa7   :  { %vm128_vm2 = vc.u32 %v103_v42, %v122_v50  ;;  %v267_v59 = vshrl.u32 %v263_v25, 16  ;;  %v277_v60 = vadd.s32 %v275_v57, %v273_v52  ;;  %v223_v26 = vsel %vm219_vm7, %v203_v54, %v951_v43 }
  0xa8   :  { %v225_v53 = vsel %vm221_vm10, %v953_v44, %v224_v15  ;;  %v129_v61 = vadd.s32 1, %v125_v55  ;;  %v257_v63 = vadd.s32 %v256_v51, %v247_v56  ;;  %v126_v22 = vmul.u32 %v890_v48, %v986_v62 }
  0xa9   :  { %v269_v20 = vshrl.u32 %v264_v58, 16  ;;  %v278_v7 = vadd.s32 %v277_v60, %v267_v59  ;;  %v276_v1 = vadd.s32 %v272_v47, %v268_v38  ;;  %v226_v11 = vsel %vm220_vm11, %v223_v26, %v225_v53 }
  0xaa   :  { %v130_v9 = vsel %vm128_vm2, %v129_v61, %v125_v55  ;;  %v280_v27 = vmul.u32 %v909_v0, %v226_v11  ;;  %v127_v13 = vadd.s32 %v122_v50, %v103_v42  ;;  %vm35_vm8 = vcmp.lt.s32.totalorder %v850_v5, 0 }
  0xab   :  { %v131_v18 = vadd.s32 %v130_v9, %v126_v22  ;;  %v279_v23 = vadd.s32 %v278_v7, %v269_v20  ;;  %vm282_vm3 = vc.u32 %v257_v63, %v276_v1  ;;  %v281_v38 = vadd.s32 %v276_v1, %v257_v63 }
  0xac   :  { %vm1027_vm9 = vcmp.le.f32.partialorder %v33_v8, 0.7853982  ;;  %vm189_vm10 = vcmp.lt.s32.totalorder %v854_v12, 0  ;;  %vm1037_vm11 = vcmp.le.f32.partialorder %v187_v17, 0.7853982  ;;  %vm176_vm12 = vweird.f32 %v850_v5  ;;  %v709_v8 = vpop.permute.xlu0 %708 }
  0xad   :  { %v132_v43 = vadd.s32 536870912, %v131_v18  ;;  %v283_v25 = vadd.s32 1, %v279_v23 }
  0xaf   :  { %v133_v44 = vshrl.u32 %v132_v43, 30  ;;  %v284_v28 = vsel %vm282_vm3, %v283_v25, %v279_v23 }
  0xb0   :  { %v285_v29 = vadd.s32 %v284_v28, %v280_v27 }
  0xb1   :  { %v134_v21 = vshll.u32 %v133_v44, 30  ;;  %v157_v61 = vsub.s32 4, %v133_v44 }
  0xb2   :  { %v286_v3 = vadd.s32 536870912, %v285_v29 }
  0xb3   :  { %v135_v48 = vsub.s32 %v131_v18, %v134_v21  ;;  %v158_v9 = vsel %vm35_vm8, %v157_v61, %v133_v44 }
  0xb4   :  { %v1021_v62 = vshrl.u32 %v286_v3, 30  ;;  %v160_v44 = vsel %vm1027_vm9, 0, %v158_v9 }
  0xb5   :  { %vm136_vm4 = vcmp.lt.s32.totalorder %v135_v48, 0  ;;  %v137_v4 = vsub.s32 0, %v135_v48 }
  0xb6   :  { %v288_v19 = vshll.u32 %v1021_v62, 30  ;;  %v311_v23 = vsub.s32 4, %v1021_v62 }
  0xb7   :  { %v138_v2 = vsel %vm136_vm4, %v137_v4, %v135_v48 }
  0xb8   :  { %v139_v58 = vclz %v138_v2  ;;  %v289_v6 = vsub.s32 %v285_v29, %v288_v19  ;;  %v312_v17 = vsel %vm189_vm10, %v311_v23, %v1021_v62  ;;  %v485_v2 = vadd.s32 3, %v160_v44 }
  0xba   :  { %v751_v10 = vadd.s32 4294967294, %v139_v58  ;;  %vm290_vm5 = vcmp.lt.s32.totalorder %v289_v6, 0  ;;  %v291_v14 = vsub.s32 0, %v289_v6 }
  0xbc   :  { %vm752_vm6 = vcmp.lt.s32.totalorder %v751_v10, 0  ;;  %v292_v0 = vsel %vm290_vm5, %v291_v14, %v289_v6 }
  0xbd   :  { %v142_v31 = vsel %vm752_vm6, 0, %v751_v10  ;;  %v293_v32 = vclz %v292_v0  ;;  %v177_v0 = vand.u32 3, %v160_v44 }
  0xbe   :  { %v143_v36 = vsub.s32 32, %v142_v31  ;;  %v147_v37 = vsub.s32 4294967266, %v142_v31  ;;  %v144_v40 = vshll.u32 %v135_v48, %v142_v31  ;;  %v314_v31 = vsel %vm1037_vm11, 0, %v312_v17 }
  0xbf   :  { %v754_v39 = vadd.s32 4294967294, %v293_v32  ;;  %vm178_vm13 = vcmp.lt.s32.totalorder %v177_v0, 2  ;;  %vm179_vm14 = vcmp.eq.s32.totalorder %v177_v0, 0  ;;  %vm182_vm15 = vcmp.eq.s32.totalorder %v177_v0, 2 }
  0xc0   :  { %v145_v41 = vshrl.u32 %v127_v13, %v143_v36  ;;  %v148_v24 = vadd.s32 127, %v147_v37 }
  0xc1   :  { %vm755_vm7 = vcmp.lt.s32.totalorder %v754_v39, 0 }
  0xc2   :  { %v146_v45 = vor.u32 %v145_v41, %v144_v40  ;;  %v149_v46 = vshll.u32 %v148_v24, 23  ;;  %v296_v35 = vsel %vm755_vm7, 0, %v754_v39  ;;  %v486_v39 = vand.u32 3, %v485_v2 }
  0xc3   :  { %v297_v47 = vsub.s32 32, %v296_v35  ;;  %v301_v15 = vsub.s32 4294967266, %v296_v35  ;;  %v298_v49 = vshll.u32 %v289_v6, %v296_v35  ;;  %v640_v41 = vadd.s32 3, %v314_v31 }
  0xc4   :  { %v150_v30 = vor.u32 4788187, %v149_v46  ;;  %v153_v54 = vcvt.s32.f32 %v146_v45  ;;  %vm487_vm0 = vcmp.lt.s32.totalorder %v486_v39, 2  ;;  %vm488_vm1 = vcmp.eq.s32.totalorder %v486_v39, 0 }
  0xc5   :  { %v299_v16 = vshrl.u32 %v281_v38, %v297_v47  ;;  %v302_v51 = vadd.s32 127, %v301_v15  ;;  %vm491_vm2 = vcmp.eq.s32.totalorder %v486_v39, 2 }
  0xc6   :  { %v151_v52 = vand.u32 2147483647, %v150_v30  ;;  %v641_v30 = vand.u32 3, %v640_v41 }
  0xc7   :  { %v300_v42 = vor.u32 %v299_v16, %v298_v49  ;;  %v303_v50 = vshll.u32 %v302_v51, 23  ;;  %v331_v49 = vand.u32 3, %v314_v31 }
  0xc8   :  { %v154_v55 = vmul.f32 %v153_v54, %v151_v52  ;;  %vm642_vm5 = vcmp.lt.s32.totalorder %v641_v30, 2  ;;  %vm643_vm6 = vcmp.eq.s32.totalorder %v641_v30, 0  ;;  %vm646_vm7 = vcmp.eq.s32.totalorder %v641_v30, 2 }
  0xc9   :  { %v304_v56 = vor.u32 4788187, %v303_v50  ;;  %v307_v60 = vcvt.s32.f32 %v300_v42  ;;  %vm332_vm3 = vcmp.lt.s32.totalorder %v331_v49, 2  ;;  %vm333_vm4 = vcmp.eq.s32.totalorder %v331_v49, 0 }
  0xca   :  { %v155_v57 = vxor.u32 2147483648, %v154_v55 }
  0xcb   :  { %v305_v59 = vand.u32 2147483647, %v304_v56 }
  0xcc   :  { %v156_v53 = vsel %vm35_vm8, %v155_v57, %v154_v55  ;;  %vm336_vm8 = vcmp.eq.s32.totalorder %v331_v49, 2 }
  0xcd   :  { %v159_v63 = vsel %vm1027_vm9, %v850_v5, %v156_v53  ;;  %v308_v22 = vmul.f32 %v307_v60, %v305_v59  ;;  %vm330_vm9 = vweird.f32 %v854_v12 }
  0xce   :  { %v161_v20 = vmul.f32 %v159_v63, %v159_v63 }
  0xcf   :  { %v309_v7 = vxor.u32 2147483648, %v308_v22 }
  0xd0   :  { %v162_v1 = vmul.f32 -0.001358992, %v161_v20  ;;  %v169_v11 = vmul.f32 -0.00019511016, %v161_v20 }
  0xd1   :  { %v310_v18 = vsel %vm189_vm10, %v309_v7, %v308_v22  ;;  %vm674_vm10 = vcmask 523264  }
  0xd2   :  { %v163_v43 = vadd.f32 0.041655596, %v162_v1  ;;  %v170_v25 = vadd.f32 0.008332121, %v169_v11  ;;  %v313_v27 = vsel %vm1037_vm11, %v854_v12, %v310_v18  ;;  %v711_v1 = vpop.permute.xlu1 %710  ;;  %vm671_vm11 = vcmask 261120  }
  0xd3   :  { %v315_v28 = vmul.f32 %v313_v27, %v313_v27 }
  0xd4   :  { %v164_v29 = vmul.f32 %v163_v43, %v161_v20  ;;  %v171_v21 = vmul.f32 %v170_v25, %v161_v20 }
  0xd5   :  { %v316_v3 = vmul.f32 -0.001358992, %v315_v28  ;;  %v323_v48 = vmul.f32 -0.00019511016, %v315_v28 }
  0xd6   :  { %v165_v4 = vadd.f32 -0.4999988, %v164_v29  ;;  %v172_v19 = vadd.f32 -0.16666654, %v171_v21 }
  0xd7   :  { %v317_v58 = vadd.f32 0.041655596, %v316_v3  ;;  %v324_v6 = vadd.f32 0.008332121, %v323_v48 }
  0xd8   :  { %v166_v10 = vmul.f32 %v165_v4, %v161_v20  ;;  %v173_v14 = vmul.f32 %v172_v19, %v161_v20  ;;  %v721_v19 = vsub.f32 0.0, %v711_v1 }
  0xd9   :  { %v318_v32 = vmul.f32 %v317_v58, %v315_v28  ;;  %v325_v13 = vmul.f32 %v324_v6, %v315_v28 }
  0xda   :  { %v167_v36 = vadd.f32 1.0, %v166_v10  ;;  %v174_v37 = vadd.f32 1.0, %v173_v14 }
  0xdb   :  { %v319_v40 = vadd.f32 -0.4999988, %v318_v32  ;;  %v326_v62 = vadd.f32 -0.16666654, %v325_v13 }
  0xdc   :  { %v175_v24 = vmul.f32 %v174_v37, %v159_v63  ;;  %v183_v45 = vxor.u32 2147483648, %v167_v36 }
  0xdd   :  { %v320_v46 = vmul.f32 %v319_v40, %v315_v28  ;;  %v327_v35 = vmul.f32 %v326_v62, %v315_v28 }
  0xde   :  { %v180_v38 = vxor.u32 2147483648, %v175_v24  ;;  %v493_v51 = vsel %vm491_vm2, %v183_v45, %v175_v24  ;;  %v184_v54 = vsel %vm182_vm15, %v183_v45, %v175_v24  ;;  %v720_v24 = vsub.f32 0.0, %v709_v8 }
  0xdf   :  { %v321_v47 = vadd.f32 1.0, %v320_v46  ;;  %v328_v15 = vadd.f32 1.0, %v327_v35 }
  0xe0   :  { %v490_v16 = vsel %vm488_vm1, %v167_v36, %v180_v38  ;;  %v181_v52 = vsel %vm179_vm14, %v167_v36, %v180_v38 }
  0xe1   :  { %v494_v42 = vsel %vm487_vm0, %v490_v16, %v493_v51  ;;  %v185_v50 = vsel %vm178_vm13, %v181_v52, %v184_v54  ;;  %v329_v55 = vmul.f32 %v328_v15, %v313_v27  ;;  %v337_v56 = vxor.u32 2147483648, %v321_v47 }
  0xe2   :  { %v1054_v57 = vsel %vm176_vm12, nan, %v494_v42  ;;  %v1058_v59 = vsel %vm176_vm12, nan, %v185_v50  ;;  %v716_v27 = vlaneseq  ;;  %vm677_vm13 = vcmask 785408  }
  0xe3   :  { %682 = vrot.lane.b32.xlu2 %v1054_v57, %s813_s2  ;;  %653 = vrot.lane.b32.xlu1 %v1058_v59, %s813_s2  ;;  %v334_v60 = vxor.u32 2147483648, %v329_v55  ;;  %v648_v53 = vsel %vm646_vm7, %v337_v56, %v329_v55  ;;  %v338_v63 = vsel %vm336_vm8, %v337_v56, %v329_v55 }
  0xe4   :  { %v717_v28 = vand.u32 127, %v716_v27 }
  0xe5   :  { %v645_v26 = vsel %vm643_vm6, %v321_v47, %v334_v60  ;;  %v335_v61 = vsel %vm333_vm4, %v321_v47, %v334_v60 }
  0xe6   :  { %v649_v5 = vsel %vm642_vm5, %v645_v26, %v648_v53  ;;  %v339_v22 = vsel %vm332_vm3, %v335_v61, %v338_v63  ;;  %v718_v21 = vand.u32 1, %v717_v28 }
  0xe7   :  { %v340_v20 = vsel %vm330_vm9, nan, %v339_v22  ;;  %v650_v7 = vsel %vm330_vm9, nan, %v649_v5 }
  0xe8   :  { %661 = vrot.lane.b32.xlu0 %v340_v20, %s814_s21  ;;  %vm1070_vm12 = vcmp.eq.s32.totalorder %v718_v21, 0 }
  0xeb   :  { %684 = vrot.lane.b32.xlu2 %v650_v7, %s813_s2  ;;  %655 = vrot.lane.b32.xlu1 %v340_v20, %s813_s2 }
  0xf0   :  { %665 = vrot.lane.b32.xlu0 %v1058_v59, %s815_s22 }
  0xf3   :  { %659 = vrot.lane.b32.xlu2 %v1058_v59, %s814_s21  ;;  %688 = vrot.lane.b32.xlu1 %v1054_v57, %s814_s21 }
  0xf8   :  { %696 = vrot.lane.b32.xlu0 %v650_v7, %s815_s22 }
  0xfb   :  { %690 = vrot.lane.b32.xlu2 %v650_v7, %s814_s21  ;;  %667 = vrot.lane.b32.xlu1 %v340_v20, %s815_s22 }
 0x103   :  { %694 = vrot.lane.b32.xlu2 %v1054_v57, %s815_s22  ;;  %712 = vrot.lane.b32.xlu1 %v877_v34, %s816_s23 }
 0x10b   :  { %714 = vrot.lane.b32.xlu2 %v872_v33, %s816_s23 }
 0x13d   :  { %v683_v12 = vpop.permute.xlu2 %682 }
 0x13e   :  { %v700_v40 = vsel %vm671_vm11, %v1054_v57, %v683_v12 }
 0x145   :  { %v685_v9 = vpop.permute.xlu2 %684 }
 0x146   :  { %v701_v3 = vsel %vm671_vm11, %v650_v7, %v685_v9 }
 0x14d   :  { %v660_v11 = vpop.permute.xlu2 %659 }
 0x155   :  { %v654_v18 = vpop.permute.xlu1 %653  ;;  %v691_v23 = vpop.permute.xlu2 %690 }
 0x156   :  { %v703_v2 = vsel %vm674_vm10, %v701_v3, %v691_v23  ;;  %v672_v37 = vsel %vm671_vm11, %v1058_v59, %v654_v18 }
 0x157   :  { %v675_v41 = vsel %vm674_vm10, %v672_v37, %v660_v11 }
 0x15a   :  { %v662_v43 = vpop.permute.xlu0 %661 }
 0x15d   :  { %v656_v25 = vpop.permute.xlu1 %655  ;;  %v695_v44 = vpop.permute.xlu2 %694 }
 0x15e   :  { %v673_v58 = vsel %vm671_vm11, %v340_v20, %v656_v25 }
 0x15f   :  { %v676_v0 = vsel %vm674_vm10, %v673_v58, %v662_v43 }
 0x162   :  { %v666_v29 = vpop.permute.xlu0 %665 }
 0x163   :  { %v678_v45 = vsel %vm677_vm13, %v675_v41, %v666_v29 }
 0x164   :  { %v724_v38 = vmul.f32 %v877_v34, %v678_v45 }
 0x165   :  { %v689_v17 = vpop.permute.xlu1 %688  ;;  %v715_v4 = vpop.permute.xlu2 %714 }
 0x166   :  { %v723_v14 = vsel %vm1070_vm12, %v721_v19, %v715_v4  ;;  %v702_v62 = vsel %vm674_vm10, %v700_v40, %v689_v17 }
 0x16a   :  { %v697_v6 = vpop.permute.xlu0 %696 }
 0x16b   :  { %v705_v10 = vsel %vm677_vm13, %v703_v2, %v697_v6 }
 0x16c   :  { %v727_v32 = vmul.f32 %v723_v14, %v705_v10 }
 0x16d   :  { %v668_v31 = vpop.permute.xlu1 %667 }
 0x16e   :  { %v679_v13 = vsel %vm677_vm13, %v676_v0, %v668_v31 }
 0x16f   :  { %v725_v36 = vmul.f32 %v872_v33, %v679_v13  ;;  %v704_v33 = vsel %vm677_vm13, %v702_v62, %v695_v44 }
 0x171   :  { %v729_v39 = vadd.f32 %v727_v32, %v725_v36 }
 0x173   :  { %731 = vst [vmem:[#allocation2 + $0x8] sm:$0xff] %v729_v39 }
 0x175   :  { %v713_v46 = vpop.permute.xlu1 %712 }
 0x176   :  { %v722_v35 = vsel %vm1070_vm12, %v720_v24, %v713_v46 }
 0x177   :  { %v726_v47 = vmul.f32 %v722_v35, %v704_v33 }
 0x179   :  { %v728_v15 = vadd.f32 %v726_v47, %v724_v38 }
 0x17b   :  { %730 = vst [vmem:[#allocation2] sm:$0xff] %v728_v15 }
 0x17c   :  { %744 = dma.vmem_to_hbm [thread:$0]  %s737_s25, 256, %s739_s28, [#allocation3], %s818_s29, %s818_s29, %s819_s30  }
 0x17d   :  { %803 = dma.done.wait [#allocation3], 256  }
 0x17e   :  { %804 = vsyncadd [#allocation3], 4294967040 }
 0x17f   :  { %749 = vsyncpa [#allocation3], 1 }

</bundles_post_ra>
